<compile_context>
chip_gen: v5e
topology: v5e:2x2
jax: 0.10.0
libtpu: 0.0.40
codegen_flags: <defaults>
</compile_context>

<pallas_src>
import jax
import jax.numpy as jnp
from jax.experimental import pallas as pl
from jax.experimental.pallas import tpu as pltpu

EPS = 1e-5


def _round_up(v, m):
    return ((v + m - 1) // m) * m


def _vmem_limit_bytes():
    """Chip-aware scoped-VMEM limit: ~75% of physical VMEM (96 MiB on 128-MiB
    v5e/v6e, 48 MiB on 64-MiB v7x), with a conservative fallback."""
    try:
        cap = int(pltpu.get_tpu_info().vmem_capacity_bytes)
    except Exception:
        cap = 64 * 1024 * 1024
    return max(32 * 1024 * 1024, (cap * 3) // 4)


def _pick_row_tile(rows, target, max_rows):
    """Row (sublane) tile.  Prefer a tile that divides `rows` exactly so the
    wrapper never pads / slices; fall back to padding only for ragged rows."""
    target = max(8, min(target, max_rows))
    target -= target % 8
    target = max(target, 8)
    if rows <= target:
        return rows, False                 # single full-extent block, no pad
    if rows % 8 == 0:
        tm = target
        while tm >= 8 and rows % tm != 0:
            tm -= 8
        if tm >= 8:
            return tm, False               # exact divisor, no pad
    return target, True                    # ragged tail: pad rows


def _pick_col_tile(dout_pad, d, w_itemsize, budget):
    """Lane tile for weight/output: a multiple of 128 (prefer 512..256, MXU
    friendly) dividing the padded Dout whose double-buffered weight block fits
    the VMEM budget."""
    for tn in (512, 384, 256, 128):
        if dout_pad % tn == 0 and d * tn * w_itemsize * 2 <= budget:
            return tn
    return 128


# ----------------------------- LayerNorm kernel ------------------------------
def _layernorm_kernel(x_ref, g_ref, b_ref, o_ref):
    # x_ref: (TM, D); g_ref/b_ref: (1, D). Stats in f32, output in x's dtype.
    x = x_ref[...].astype(jnp.float32)
    mean = jnp.mean(x, axis=-1, keepdims=True)
    xc = x - mean
    var = jnp.mean(xc * xc, axis=-1, keepdims=True)
    inv = jax.lax.rsqrt(var + EPS)
    y = xc * inv * g_ref[...].astype(jnp.float32) + b_ref[...].astype(jnp.float32)
    o_ref[...] = y.astype(o_ref.dtype)


def layernorm_pallas(x, gamma, beta, *, block_rows=1024):
    """LayerNorm over the last dim of x = [..., D], row-tiled over leading dims."""
    orig_shape = x.shape
    D = orig_shape[-1]
    R = 1
    for s in orig_shape[:-1]:
        R *= s
    x2 = x.reshape(R, D)

    vmem_limit = _vmem_limit_bytes()
    # x tile (double-buffered) + f32 working copy + out tile (double-buffered).
    bytes_per_row = D * (2 * x.dtype.itemsize + 4 + 2 * x.dtype.itemsize)
    max_rows = max(8, (vmem_limit // 2) // max(bytes_per_row, 1))
    TM, need_pad = _pick_row_tile(R, block_rows, max_rows)
    R_pad = _round_up(R, TM) if need_pad else R
    if R_pad != R:
        x2 = jnp.pad(x2, ((0, R_pad - R), (0, 0)))

    single = pl.Buffered(1)
    out2 = pl.pallas_call(
        _layernorm_kernel,
        out_shape=jax.ShapeDtypeStruct((R_pad, D), x.dtype),
        grid=(R_pad // TM,),
        in_specs=[
            pl.BlockSpec((TM, D), lambda r: (r, 0)),
            pl.BlockSpec((1, D), lambda r: (0, 0), pipeline_mode=single),
            pl.BlockSpec((1, D), lambda r: (0, 0), pipeline_mode=single),
        ],
        out_specs=pl.BlockSpec((TM, D), lambda r: (r, 0)),
        compiler_params=pltpu.CompilerParams(
            dimension_semantics=("parallel",),
            vmem_limit_bytes=vmem_limit,
        ),
    )(x2, gamma.reshape(1, D), beta.reshape(1, D))
    if R_pad != R:
        out2 = out2[:R]
    return out2.reshape(orig_shape)


# ----------------------- Fused PreNorm + Linear kernel ------------------------
def _prenorm_linear_kernel(x_ref, g_ref, b_ref, w_ref, bias_ref, o_ref, y_ref):
    # x_ref: (TM, D); g/b: (1, D); w_ref: (D, TN); bias: (1, TN);
    # o_ref: (TM, TN); y_ref: (TM, D) VMEM scratch in the matmul dtype.
    # Normalize the row tile once per row block (inner axis j == 0), reuse for
    # every Dout tile.
    @pl.when(pl.program_id(1) == 0)
    def _():
        x = x_ref[...].astype(jnp.float32)
        mean = jnp.mean(x, axis=-1, keepdims=True)
        xc = x - mean
        var = jnp.mean(xc * xc, axis=-1, keepdims=True)
        inv = jax.lax.rsqrt(var + EPS)
        y = xc * inv * g_ref[...].astype(jnp.float32) + b_ref[...].astype(jnp.float32)
        y_ref[...] = y.astype(y_ref.dtype)

    # MXU matmul in the weight's native dtype (bf16 fast path when w is bf16);
    # accumulate in f32 via preferred_element_type.
    out = jnp.dot(y_ref[...], w_ref[...], preferred_element_type=jnp.float32)
    out = out + bias_ref[...].astype(jnp.float32)
    o_ref[...] = out.astype(o_ref.dtype)


def prenorm_linear_pallas(x, gamma, beta, w, bias, *, block_rows=256):
    """Fused fn(LayerNorm(x)) where fn(y) = y @ w + bias.  x: [..., D]."""
    orig_shape = x.shape
    D = orig_shape[-1]
    Dout = w.shape[1]
    R = 1
    for s in orig_shape[:-1]:
        R *= s
    x2 = x.reshape(R, D)

    vmem_limit = _vmem_limit_bytes()

    # Lane-dense output: pad Dout up to a multiple of 128 so every store is a
    # full-lane vst.  The weight/bias pad is one small op; in production do it
    # once at parameter-prep time rather than per call.
    Dout_pad = _round_up(Dout, 128)
    if Dout_pad != Dout:
        w_p = jnp.pad(w, ((0, 0), (0, Dout_pad - Dout)))
        bias_p = jnp.pad(bias, (0, Dout_pad - Dout))
    else:
        w_p, bias_p = w, bias

    # Dout tiling keeps the weight footprint ~ D*TN (critical under v7x 64 MiB).
    TN = _pick_col_tile(Dout_pad, D, w_p.dtype.itemsize, vmem_limit // 3)
    nJ = Dout_pad // TN

    # Row tile: MXU-aligned target, capped so all VMEM-resident tiles fit.
    bytes_per_row = (
        2 * D * x.dtype.itemsize      # x tile, double-buffered
        + D * w_p.dtype.itemsize      # normalized-y scratch
        + 2 * TN * x.dtype.itemsize   # out tile, double-buffered
        + D * 4 + TN * 4              # f32 working values
    )
    w_bytes = (2 if nJ > 1 else 1) * D * TN * w_p.dtype.itemsize
    max_rows = max(8, (vmem_limit - w_bytes) // 2 // max(bytes_per_row, 1))
    TM, need_pad = _pick_row_tile(R, block_rows, max_rows)
    R_pad = _round_up(R, TM) if need_pad else R
    if R_pad != R:
        x2 = jnp.pad(x2, ((0, R_pad - R), (0, 0)))  # padded rows sliced off below

    single = pl.Buffered(1)
    w_mode = single if nJ == 1 else None  # weight changes with j -> keep default

    out2 = pl.pallas_call(
        _prenorm_linear_kernel,
        out_shape=jax.ShapeDtypeStruct((R_pad, Dout_pad), x.dtype),
        grid=(R_pad // TM, nJ),
        in_specs=[
            pl.BlockSpec((TM, D), lambda i, j: (i, 0)),
            pl.BlockSpec((1, D), lambda i, j: (0, 0), pipeline_mode=single),
            pl.BlockSpec((1, D), lambda i, j: (0, 0), pipeline_mode=single),
            pl.BlockSpec((D, TN), lambda i, j: (0, j), pipeline_mode=w_mode),
            pl.BlockSpec((1, TN), lambda i, j: (0, j), pipeline_mode=w_mode),
        ],
        out_specs=pl.BlockSpec((TM, TN), lambda i, j: (i, j)),
        scratch_shapes=[pltpu.VMEM((TM, D), w_p.dtype)],
        compiler_params=pltpu.CompilerParams(
            dimension_semantics=("parallel", "arbitrary"),
            vmem_limit_bytes=vmem_limit,
        ),
    )(x2, gamma.reshape(1, D), beta.reshape(1, D), w_p, bias_p.reshape(1, Dout_pad))

    if R_pad != R or Dout_pad != Dout:
        out2 = out2[:R, :Dout]
    return out2.reshape(orig_shape[:-1] + (Dout,))


# ---------------------------------- PreNorm -----------------------------------
def prenorm_forward(x, ln_gamma, ln_beta, fn, **kwargs):
    """Generic PreNorm.forward: fn(LayerNorm(x), **kwargs) for arbitrary fn."""
    return fn(layernorm_pallas(x, ln_gamma, ln_beta), **kwargs)


# --------------------------------- reference ----------------------------------
def prenorm_reference(x, ln_gamma, ln_beta, w, b):
    xf = x.astype(jnp.float32)
    mean = jnp.mean(xf, axis=-1, keepdims=True)
    var = jnp.mean((xf - mean) ** 2, axis=-1, keepdims=True)
    y = (xf - mean) * jax.lax.rsqrt(var + EPS) * ln_gamma + ln_beta
    return jnp.einsum("bnd,de->bne", y, w) + b


if __name__ == "__main__":
    key = jax.random.PRNGKey(0)
    B, N, D = 2, 8, 32  # small [batch, tokens, dim] input

    kx, kw, kbias = jax.random.split(key, 3)
    x = jax.random.normal(kx, (B, N, D), dtype=jnp.float32)

    # Deterministic parameter init (LayerNorm affine + fn's linear weights).
    ln_gamma = 1.0 + 0.01 * jnp.arange(D, dtype=jnp.float32)
    ln_beta = 0.01 * jnp.arange(D, dtype=jnp.float32)
    w = 0.05 * jax.random.normal(kw, (D, D), dtype=jnp.float32)
    b = 0.05 * jax.random.normal(kbias, (D,), dtype=jnp.float32)

    # Fast path: fused LayerNorm + linear `fn` in a single pallas_call.
    out = jax.block_until_ready(prenorm_linear_pallas(x, ln_gamma, ln_beta, w, b))

    # Generic path: standalone Pallas LayerNorm followed by an arbitrary fn.
    fn = lambda y: jnp.einsum("bnd,de->bne", y, w) + b
    out_generic = jax.block_until_ready(prenorm_forward(x, ln_gamma, ln_beta, fn))

    ref = prenorm_reference(x, ln_gamma, ln_beta, w, b)
    assert out.shape == (B, N, D)
    assert jnp.allclose(out, ref, atol=1e-5, rtol=1e-5), float(jnp.max(jnp.abs(out - ref)))
    assert jnp.allclose(out_generic, ref, atol=1e-5, rtol=1e-5), float(
        jnp.max(jnp.abs(out_generic - ref))
    )

    print("KERNEL_OK")
</pallas_src>

<mosaic_0001>
module attributes {stable_mosaic.version = 11 : i64} {
  func.func @_prenorm_linear_kernel(%arg0: i32, %arg1: i32, %arg2: memref<16x32xf32, #tpu.memory_space<vmem>>, %arg3: memref<1x32xf32, #tpu.memory_space<vmem>>, %arg4: memref<1x32xf32, #tpu.memory_space<vmem>>, %arg5: memref<32x128xf32, #tpu.memory_space<vmem>>, %arg6: memref<1x128xf32, #tpu.memory_space<vmem>>, %arg7: memref<16x128xf32, #tpu.memory_space<vmem>>, %arg8: memref<16x32xf32, #tpu.memory_space<vmem>>) attributes {dimension_semantics = [#tpu.dimension_semantics<parallel>, #tpu.dimension_semantics<arbitrary>], iteration_bounds = array<i64: 1, 1>, scalar_prefetch = 0 : i64, scratch_operands = 1 : i64, tpu.core_type = #tpu.core_type<tc>, window_params = [{transform_indices = @transform_0, window_bounds = array<i64: 16, 32>}, {pipeline_mode = #tpu.pipeline_mode<synchronous>, transform_indices = @transform_1, window_bounds = array<i64: 1, 32>}, {pipeline_mode = #tpu.pipeline_mode<synchronous>, transform_indices = @transform_2, window_bounds = array<i64: 1, 32>}, {pipeline_mode = #tpu.pipeline_mode<synchronous>, transform_indices = @transform_3, window_bounds = array<i64: 32, 128>}, {pipeline_mode = #tpu.pipeline_mode<synchronous>, transform_indices = @transform_4, window_bounds = array<i64: 1, 128>}, {transform_indices = @transform_5, window_bounds = array<i64: 16, 128>}]} {
    %c0_i32 = arith.constant 0 : i32
    %0 = arith.cmpi eq, %arg1, %c0_i32 : i32
    %1 = arith.extui %0 : i1 to i32
    %c0_i32_0 = arith.constant 0 : i32
    %2 = arith.cmpi ne, %1, %c0_i32_0 : i32
    scf.if %2 {
      %c0_8 = arith.constant 0 : index
      %c0_9 = arith.constant 0 : index
      %10 = vector.load %arg2[%c0_8, %c0_9] : memref<16x32xf32, #tpu.memory_space<vmem>>, vector<16x32xf32>
      %cst_10 = arith.constant dense<0.000000e+00> : vector<16xf32>
      %11 = vector.multi_reduction <add>, %10, %cst_10 [1] : vector<16x32xf32> to vector<16xf32>
      %12 = vector.shape_cast %11 : vector<16xf32> to vector<16x1xf32>
      %cst_11 = arith.constant 3.200000e+01 : f32
      %13 = vector.broadcast %cst_11 : f32 to vector<16x1xf32>
      %14 = arith.divf %12, %13 : vector<16x1xf32>
      %15 = vector.broadcast %14 : vector<16x1xf32> to vector<16x32xf32>
      %16 = arith.subf %10, %15 : vector<16x32xf32>
      %17 = arith.mulf %16, %16 : vector<16x32xf32>
      %cst_12 = arith.constant dense<0.000000e+00> : vector<16xf32>
      %18 = vector.multi_reduction <add>, %17, %cst_12 [1] : vector<16x32xf32> to vector<16xf32>
      %19 = vector.shape_cast %18 : vector<16xf32> to vector<16x1xf32>
      %cst_13 = arith.constant 3.200000e+01 : f32
      %20 = vector.broadcast %cst_13 : f32 to vector<16x1xf32>
      %21 = arith.divf %19, %20 : vector<16x1xf32>
      %cst_14 = arith.constant 9.99999974E-6 : f32
      %22 = vector.broadcast %cst_14 : f32 to vector<16x1xf32>
      %23 = arith.addf %21, %22 : vector<16x1xf32>
      %24 = math.rsqrt %23 : vector<16x1xf32>
      %25 = vector.broadcast %24 : vector<16x1xf32> to vector<16x32xf32>
      %26 = arith.mulf %16, %25 : vector<16x32xf32>
      %c0_15 = arith.constant 0 : index
      %c0_16 = arith.constant 0 : index
      %27 = vector.load %arg3[%c0_15, %c0_16] : memref<1x32xf32, #tpu.memory_space<vmem>>, vector<1x32xf32>
      %28 = vector.broadcast %27 : vector<1x32xf32> to vector<16x32xf32>
      %29 = arith.mulf %26, %28 : vector<16x32xf32>
      %c0_17 = arith.constant 0 : index
      %c0_18 = arith.constant 0 : index
      %30 = vector.load %arg4[%c0_17, %c0_18] : memref<1x32xf32, #tpu.memory_space<vmem>>, vector<1x32xf32>
      %31 = vector.broadcast %30 : vector<1x32xf32> to vector<16x32xf32>
      %32 = arith.addf %29, %31 : vector<16x32xf32>
      %c0_19 = arith.constant 0 : index
      %c0_20 = arith.constant 0 : index
      %33 = vector.load %arg8[%c0_19, %c0_20] : memref<16x32xf32, #tpu.memory_space<vmem>>, vector<16x32xf32>
      tpu.vector_store %arg8[%c0_19, %c0_20], %32 {strides = array<i32>} : memref<16x32xf32, #tpu.memory_space<vmem>>, vector<16x32xf32>,
    } else {
    }
    %c0 = arith.constant 0 : index
    %c0_1 = arith.constant 0 : index
    %3 = vector.load %arg8[%c0, %c0_1] : memref<16x32xf32, #tpu.memory_space<vmem>>, vector<16x32xf32>
    %c0_2 = arith.constant 0 : index
    %c0_3 = arith.constant 0 : index
    %4 = vector.load %arg5[%c0_2, %c0_3] : memref<32x128xf32, #tpu.memory_space<vmem>>, vector<32x128xf32>
    %cst = arith.constant dense<0.000000e+00> : vector<16x128xf32>
    %5 = tpu.matmul %3, %4, %cst {dimension_numbers = #tpu.dot_dimension_numbers<[1], [0], [0], [1], [0, 0, 1, 1], [], []>} : vector<16x32xf32>, vector<32x128xf32>, vector<16x128xf32> -> vector<16x128xf32>
    %c0_4 = arith.constant 0 : index
    %c0_5 = arith.constant 0 : index
    %6 = vector.load %arg6[%c0_4, %c0_5] : memref<1x128xf32, #tpu.memory_space<vmem>>, vector<1x128xf32>
    %7 = vector.broadcast %6 : vector<1x128xf32> to vector<16x128xf32>
    %8 = arith.addf %5, %7 : vector<16x128xf32>
    %c0_6 = arith.constant 0 : index
    %c0_7 = arith.constant 0 : index
    %9 = vector.load %arg7[%c0_6, %c0_7] : memref<16x128xf32, #tpu.memory_space<vmem>>, vector<16x128xf32>
    tpu.vector_store %arg7[%c0_6, %c0_7], %8 {strides = array<i32>} : memref<16x128xf32, #tpu.memory_space<vmem>>, vector<16x128xf32>,
    return
  }
  func.func @transform_0(%arg0: i32, %arg1: i32) -> (i32, i32) {
    %c0_i32 = arith.constant 0 : i32
    %c0_i32_0 = arith.constant 0 : i32
    return %arg0, %c0_i32 : i32, i32
  }
  func.func @transform_1(%arg0: i32, %arg1: i32) -> (i32, i32) {
    %c0_i32 = arith.constant 0 : i32
    %c0_i32_0 = arith.constant 0 : i32
    %c0_i32_1 = arith.constant 0 : i32
    return %c0_i32, %c0_i32_0 : i32, i32
  }
  func.func @transform_2(%arg0: i32, %arg1: i32) -> (i32, i32) {
    %c0_i32 = arith.constant 0 : i32
    %c0_i32_0 = arith.constant 0 : i32
    %c0_i32_1 = arith.constant 0 : i32
    return %c0_i32, %c0_i32_0 : i32, i32
  }
  func.func @transform_3(%arg0: i32, %arg1: i32) -> (i32, i32) {
    %c0_i32 = arith.constant 0 : i32
    %c0_i32_0 = arith.constant 0 : i32
    return %c0_i32, %arg1 : i32, i32
  }
  func.func @transform_4(%arg0: i32, %arg1: i32) -> (i32, i32) {
    %c0_i32 = arith.constant 0 : i32
    %c0_i32_0 = arith.constant 0 : i32
    return %c0_i32, %arg1 : i32, i32
  }
  func.func @transform_5(%arg0: i32, %arg1: i32) -> (i32, i32) {
    %c0_i32 = arith.constant 0 : i32
    return %arg0, %arg1 : i32, i32
  }
}

</mosaic_0001>

<bundles_post_ra>
// kernel: tpu_custom_call.1
= control target key start
LH: loop header
LB: loop body
LE: loop exit
PB: predicated region body
PF: predicated region fallthrough
CT: control target
= control target key end

     0   :  { %10 = vsyncpa [#allocation4], 0  ;;  %s396_s0 = inlined_call_operand.hbm [shape: f32[16,32], index: 0, kind: input, shape index: {}]   ;;  %s397_s1 = inlined_call_operand.hbm [shape: f32[1,32], index: 1, kind: input, shape index: {}]   ;;  %s398_s2 = inlined_call_operand.vmem [shape: f32[1,32], index: 2, kind: input, shape index: {}]   ;;  %s399_s3 = inlined_call_operand.hbm [shape: f32[32,128], index: 3, kind: input, shape index: {}]   ;;  %s400_s4 = inlined_call_operand.vmem [shape: f32[1,128], index: 4, kind: input, shape index: {}]   ;;  %s401_s5 = inlined_call_operand.hbm [shape: f32[16,128], index: 5, kind: output, shape index: {}]  }
   0x1   :  { %11 = vsyncpa [#allocation7], 0  ;;  %s31_s20 = sshll.u32 %s397_s1, 4  ;;  %s32_s20 = int_to_ptr.hbm [resolvable:$true] %s31_s20 }
   0x2   :  { %12 = vsyncpa [#allocation5], 0  ;;  %s324_s21 = smov [#allocation6]   ;;  %s17_s25 = sshll.u32 %s396_s0, 4  ;;  %s18_s25 = int_to_ptr.hbm [resolvable:$true] %s17_s25 }
   0x3   :  { %s33_s22 = sshll.u32 %s324_s21, 4  ;;  %s325_s26 = smov [#allocation3]   ;;  %s34_s22 = int_to_ptr.vmem [resolvable:$true] %s33_s22 }
   0x4   :  { %36 = dma.hbm_to_vmem [thread:$0]  %s32_s20, 16, %s34_s22, [#allocation7]  }
   0x5   :  { %s19_s27 = sshll.u32 %s325_s26, 4  ;;  %s326_s28 = smov 128   ;;  %s20_s27 = int_to_ptr.vmem [resolvable:$true] %s19_s27 }
   0x6   :  { %s327_s29 = smov 8   ;;  %s43_s6 = sshll.u32 %s399_s3, 4  ;;  %s44_s6 = int_to_ptr.hbm [resolvable:$true] %s43_s6 }
   0x7   :  { %25 = dma.hbm_to_vmem [thread:$0]  %s18_s25, 256, %s20_s27, [#allocation4], %s326_s28, %s326_s28, %s327_s29  }
   0x8   :  { %s328_s7 = smov [#allocation8]  }
   0x9   :  { %s45_s8 = sshll.u32 %s328_s7, 4  ;;  %s46_s8 = int_to_ptr.vmem [resolvable:$true] %s45_s8 }
   0xa   :  { %51 = dma.hbm_to_vmem [thread:$0]  %s44_s6, 512, %s46_s8, [#allocation7], %s326_s28, %s326_s28, %s327_s29  }
   0xb   :  { %318 = dma.done.wait [#allocation4], 256  }
   0xc   :  { %319 = vsyncadd [#allocation4], 4294967040 }
   0xd   :  { %320 = dma.done.wait [#allocation7], 528  }
   0xe   :  { %321 = vsyncadd [#allocation7], 4294966768  ;;  %vm72_vm0 = vcmask 261120   ;;  %v70_v0 = vld [vmem:[#allocation3] sm:$0xff]  ;;  %v71_v2 = vld [vmem:[#allocation3 + $0x8] sm:$0xff]  ;;  %v329_v4 = vmov 32.0  }
   0xf   :  { %v73_v1 = vsel %vm72_vm0, %v70_v0, 0.0  ;;  %v76_v3 = vsel %vm72_vm0, %v71_v2, 0.0  ;;  %216 = vrcp.f32 %v329_v4  ;;  %v143_v21 = vld [vmem:[#allocation8 + $0x18] sm:$0xff]  ;;  %v142_v22 = vld [vmem:[#allocation8 + $0x10] sm:$0xff]  ;;  %v141_v25 = vld [vmem:[#allocation8 + $0x8] sm:$0xff]  ;;  %s330_s10 = smov [#allocation9]  }
  0x10   :  { %74 = vadd.xlane.f32.xlu0 %v73_v1  ;;  %167 = vmatpush.msra.mxu0 %v143_v21  ;;  %v140_v27 = vld [vmem:[#allocation8] sm:$0xff]  ;;  %v213_v39 = vld [vmem:[#allocation6] ss:$0 sm:$0xff]  ;;  %s184_s11 = sshll.u32 %s330_s10, 4  ;;  %s186_s14 = sshll.u32 %s401_s5, 4  ;;  %s185_s11 = int_to_ptr.vmem [resolvable:$true] %s184_s11  ;;  %s187_s14 = int_to_ptr.hbm [resolvable:$true] %s186_s14 }
  0x11   :  { %202 = vmatpush.msra.mxu1 %v143_v21  ;;  %v214_v42 = vld [vmem:[%s398_s2] ss:$0 sm:$0xff] }
  0x12   :  { %168 = vmatpush.msra.mxu0 %v142_v22  ;;  %v215_v55 = vld [vmem:[%s400_s4] ss:$0 sm:$0xff] }
  0x13   :  { %203 = vmatpush.msra.mxu1 %v142_v22 }
  0x14   :  { %169 = vmatpush.msra.mxu0 %v141_v25 }
  0x15   :  { %v217_v5 = vpop.eup %216  ;;  %204 = vmatpush.msra.mxu1 %v141_v25 }
  0x16   :  { %v80_v6 = vmul.f32 32.0, %v217_v5  ;;  %vm84_vm1 = vweird.f32 %v217_v5  ;;  %170 = vmatpush.msra.mxu0 %v140_v27 }
  0x17   :  { %205 = vmatpush.msra.mxu1 %v140_v27 }
  0x18   :  { %77 = vadd.xlane.f32.xlu0 %v76_v3  ;;  %v81_v7 = vsub.f32 1.0, %v80_v6 }
  0x1a   :  { %v82_v8 = vmul.f32 %v217_v5, %v81_v7 }
  0x1c   :  { %v83_v9 = vadd.f32 %v217_v5, %v82_v8 }
  0x1e   :  { %v85_v10 = vsel %vm84_vm1, %v217_v5, %v83_v9 }
  0x83   :  { %v75_v11 = vpop.xlane.xlu0 %74 }
  0x84   :  { %v86_v12 = vmul.f32 %v85_v10, %v75_v11 }
  0x86   :  { %v88_v13 = vsub.f32 %v70_v0, %v86_v12 }
  0x88   :  { %v90_v14 = vmul.f32 %v88_v13, %v88_v13 }
  0x8a   :  { %v92_v15 = vsel %vm72_vm0, %v90_v14, 0.0 }
  0x8b   :  { %93 = vadd.xlane.f32.xlu1 %v92_v15  ;;  %v78_v16 = vpop.xlane.xlu0 %77 }
  0x8c   :  { %v87_v17 = vmul.f32 %v85_v10, %v78_v16 }
  0x8e   :  { %v89_v18 = vsub.f32 %v71_v2, %v87_v17 }
  0x90   :  { %v91_v19 = vmul.f32 %v89_v18, %v89_v18 }
  0x92   :  { %v95_v20 = vsel %vm72_vm0, %v91_v19, 0.0 }
  0x93   :  { %96 = vadd.xlane.f32.xlu1 %v95_v20 }
  0xfe   :  { %v94_v23 = vpop.xlane.xlu1 %93 }
  0xff   :  { %v98_v24 = vmul.f32 %v94_v23, %v85_v10 }
 0x101   :  { %v100_v26 = vadd.f32 1e-05, %v98_v24 }
 0x103   :  { %218 = vrsqrt.f32 %v100_v26  ;;  %vm108_vm3 = vweird.f32 %v100_v26 }
 0x106   :  { %v97_v28 = vpop.xlane.xlu1 %96 }
 0x107   :  { %v99_v29 = vmul.f32 %v97_v28, %v85_v10 }
 0x109   :  { %v219_v30 = vpop.eup %218  ;;  %v101_v31 = vadd.f32 1e-05, %v99_v29 }
 0x10a   :  { %v103_v32 = vmul.f32 %v219_v30, %v100_v26  ;;  %vm109_vm2 = vweird.f32 %v219_v30 }
 0x10b   :  { %220 = vrsqrt.f32 %v101_v31  ;;  %vm110_vm4 = vmor %vm108_vm3, %vm109_vm2  ;;  %vm118_vm6 = vweird.f32 %v101_v31 }
 0x10c   :  { %v104_v33 = vmul.f32 %v219_v30, %v103_v32 }
 0x10e   :  { %v105_v34 = vmul.f32 0.5, %v104_v33 }
 0x110   :  { %v106_v35 = vsub.f32 1.5, %v105_v34 }
 0x111   :  { %v221_v36 = vpop.eup %220 }
 0x112   :  { %v107_v37 = vmul.f32 %v219_v30, %v106_v35  ;;  %v113_v38 = vmul.f32 %v221_v36, %v101_v31  ;;  %vm119_vm5 = vweird.f32 %v221_v36 }
 0x113   :  { %vm120_vm7 = vmor %vm118_vm6, %vm119_vm5 }
 0x114   :  { %v111_v40 = vsel %vm110_vm4, %v219_v30, %v107_v37  ;;  %v114_v41 = vmul.f32 %v221_v36, %v113_v38 }
 0x115   :  { %v122_v43 = vmul.f32 %v111_v40, %v88_v13 }
 0x116   :  { %v115_v44 = vmul.f32 0.5, %v114_v41 }
 0x117   :  { %v128_v45 = vmul.f32 %v213_v39, %v122_v43 }
 0x118   :  { %v116_v46 = vsub.f32 1.5, %v115_v44 }
 0x119   :  { %v134_v47 = vadd.f32 %v214_v42, %v128_v45 }
 0x11a   :  { %v117_v48 = vmul.f32 %v221_v36, %v116_v46 }
 0x11b   :  { %136 = vst.msk [vmem:[#allocation2] sm:$0xff] %vm72_vm0, %v134_v47 }
 0x11c   :  { %v121_v49 = vsel %vm120_vm7, %v221_v36, %v117_v48 }
 0x11d   :  { %v123_v50 = vmul.f32 %v121_v49, %v89_v18 }
 0x11f   :  { %v129_v51 = vmul.f32 %v213_v39, %v123_v50 }
 0x121   :  { %v135_v52 = vadd.f32 %v214_v42, %v129_v51 }
 0x122   :  { %v138_v53 = vld [vmem:[#allocation2] sm:$0xff] }
 0x123   :  { %137 = vst.msk [vmem:[#allocation2 + $0x8] sm:$0xff] %vm72_vm0, %v135_v52  ;;  %200 = vmatmul.msk.f32.vlgmr.msra.gmra.mxu0 %vm72_vm0, %v138_v53 }
 0x12a   :  { %v139_v54 = vld [vmem:[#allocation2 + $0x8] sm:$0xff] }
 0x12b   :  { %201 = vmatmul.msk.f32.vlgmr.msra.gmra.mxu1 %vm72_vm0, %v139_v54 }
 0x1a0   :  { %v172_v56 = vpop.f32.mrf.mxu0 }
 0x1a1   :  { %v173_v57 = vadd.f32 %v215_v55, %v172_v56 }
 0x1a3   :  { %178 = vst [vmem:[#allocation9] sm:$0xff] %v173_v57 }
 0x1a8   :  { %v175_v58 = vpop.f32.mrf.mxu1 }
 0x1a9   :  { %v176_v59 = vadd.f32 %v215_v55, %v175_v58 }
 0x1ab   :  { %179 = vst [vmem:[#allocation9 + $0x8] sm:$0xff] %v176_v59 }
 0x1ac   :  { %192 = dma.vmem_to_hbm [thread:$0]  %s185_s11, 256, %s187_s14, [#allocation5], %s326_s28, %s326_s28, %s327_s29  }
 0x1ad   :  { %322 = dma.done.wait [#allocation5], 256  }
 0x1ae   :  { %323 = vsyncadd [#allocation5], 4294967040 }
 0x1af   :  { %197 = vsyncpa [#allocation4], 1 }
 0x1b0   :  { %198 = vsyncpa [#allocation7], 1 }
 0x1b1   :  { %199 = vsyncpa [#allocation5], 1 }

</bundles_post_ra>
